<compile_context>
chip_gen: v7x
topology: tpu7x:2x2x1
jax: 0.10.0
libtpu: 0.0.40
codegen_flags: <defaults>
</compile_context>

<pallas_src>
import jax
import jax.numpy as jnp
from jax.experimental import pallas as pl
from jax.experimental.pallas import tpu as pltpu

# ---------------- model dims (small, consistent with the module) ----------------
OUTPUT_DIM = 64     # vocab size
EMB_DIM    = 32     # == HID_DIM so per-layer weight shapes stack uniformly
HID_DIM    = 32
N_LAYERS   = 2
BATCH      = 8

GATE      = 4 * HID_DIM          # 128 lanes: exactly one vreg wide
BIAS_ROWS = 8                    # sublane-aligned; == BATCH so bias adds need no broadcast

# Row offsets inside the packed LSTM weight buffer (all multiples of 8).
OFF_EMBW0 = 0                                       # [V, 4H]   embedding @ W_ih0^T
OFF_WIH   = OUTPUT_DIM                              # layers 1..L-1: [H, 4H] each
OFF_WHH   = OFF_WIH + (N_LAYERS - 1) * HID_DIM      # all layers:    [H, 4H] each
OFF_B     = OFF_WHH + N_LAYERS * HID_DIM            # fused biases, replicated to 8 rows
W_PACK_ROWS = OFF_B + N_LAYERS * BIAS_ROWS          # = 176
HEAD_ROWS   = HID_DIM + BIAS_ROWS                   # = 40  (W_out^T rows + replicated b_out)


def _decoder_kernel(tok_ref, w_ref, head_ref, h_ref, c_ref,
                    pred_ref, hout_ref, cout_ref):
    """Whole decoder step in one invocation: embedding lookup (folded into layer-0
    weights), both LSTM layers (single time step, unrolled), and the output Linear."""
    B, H, V, L = BATCH, HID_DIM, OUTPUT_DIM, N_LAYERS

    # ---- recurrent terms r_l = h_l @ W_hh_l^T + (b_ih_l + b_hh_l).
    # They depend only on the incoming state, so hoist them all to the top: their MXU
    # pushes pipeline together and layer l keeps only x @ W_ih_l^T on the serial path.
    r = []
    for l in range(L):
        whh = w_ref[OFF_WHH + l * H: OFF_WHH + (l + 1) * H, :]               # [H, 4H]
        b   = w_ref[OFF_B + l * BIAS_ROWS: OFF_B + l * BIAS_ROWS + B, :]     # [B, 4H]
        r.append(jnp.dot(h_ref[l], whh, preferred_element_type=jnp.float32) + b)

    # ---- embedding gather folded into layer-0 input weights:
    # x0 @ W_ih0^T == onehot(tok) @ (embedding @ W_ih0^T)   (exact: one nonzero per row).
    lane = jax.lax.broadcasted_iota(jnp.int32, (B, V), 1)
    row  = jax.lax.broadcasted_iota(jnp.int32, (B, V), 0)
    onehot = jnp.zeros((B, V), jnp.float32)
    for bi in range(B):                        # B SMEM scalar reads -> cheap VPU selects
        onehot = jnp.where((row == bi) & (lane == tok_ref[bi]), 1.0, onehot)
    gx0 = jnp.dot(onehot, w_ref[OFF_EMBW0: OFF_EMBW0 + V, :],
                  preferred_element_type=jnp.float32)                        # [B, 4H]
    # TODO(synk): nn.Dropout on the embedding omitted (eval-mode identity).

    # ---- unrolled multi-layer LSTM, single time step.  PyTorch gate order: i, f, g, o.
    x = None
    for l in range(L):
        if l == 0:
            gates = gx0 + r[0]
        else:
            wih = w_ref[OFF_WIH + (l - 1) * H: OFF_WIH + l * H, :]           # [H, 4H]
            gates = jnp.dot(x, wih, preferred_element_type=jnp.float32) + r[l]

        # Full-width activations (EUP slot has slack); slice lanes only for the state math.
        sig = jax.nn.sigmoid(gates)                                           # [B, 4H]
        tng = jnp.tanh(gates)                                                 # [B, 4H]
        i_g = sig[:, 0 * H:1 * H]
        f_g = sig[:, 1 * H:2 * H]
        g_g = tng[:, 2 * H:3 * H]
        o_g = sig[:, 3 * H:4 * H]

        c_new = f_g * c_ref[l] + i_g * g_g
        h_new = o_g * jnp.tanh(c_new)
        hout_ref[l] = h_new
        cout_ref[l] = c_new
        x = h_new                                                             # feed next layer

    # ---- output head: output.squeeze(0) @ W_out^T + b_out
    w_out = head_ref[0:H, :]                                                  # [H, V]
    b_out = head_ref[H:H + B, :]                                              # [B, V]
    pred_ref[...] = jnp.dot(x, w_out, preferred_element_type=jnp.float32) + b_out


def prepare_params(params):
    """One-time layout prep (hoisted out of the per-step call):
    fold embedding into layer-0 input weights, transpose all weights, pre-sum biases,
    and pack every constant operand into two contiguous buffers (two DMAs total)."""
    L, H, V, G = N_LAYERS, HID_DIM, OUTPUT_DIM, GATE
    hp = jax.lax.Precision.HIGHEST

    emb_w0 = jnp.dot(params["embedding"], params["w_ih"][0].T, precision=hp)  # [V, 4H]
    blocks = [emb_w0]
    for l in range(1, L):
        blocks.append(params["w_ih"][l].T)                                    # [H, 4H]
    for l in range(L):
        blocks.append(params["w_hh"][l].T)                                    # [H, 4H]
    for l in range(L):
        b = (params["b_ih"][l] + params["b_hh"][l]).reshape(1, G)
        blocks.append(jnp.broadcast_to(b, (BIAS_ROWS, G)))                    # replicated
    w_pack = jnp.concatenate(blocks, axis=0)                                  # [176, 128]
    assert w_pack.shape == (W_PACK_ROWS, G)

    head = jnp.concatenate(
        [params["w_out"].T,                                                   # [H, V]
         jnp.broadcast_to(params["b_out"].reshape(1, V), (BIAS_ROWS, V))],
        axis=0)                                                               # [40, 64]
    assert head.shape == (HEAD_ROWS, V)
    return {"w_pack": w_pack, "head": head}


@jax.jit
def decoder_forward(tokens, hidden, cell, prep):
    """tokens:[B] int32, hidden/cell:[L,B,H] -> (pred[B,V], hidden[L,B,H], cell[L,B,H])."""
    B, H, L, V = BATCH, HID_DIM, N_LAYERS, OUTPUT_DIM
    tok = tokens.astype(jnp.int32)

    vmem = pl.BlockSpec(memory_space=pltpu.MemorySpace.VMEM)
    smem = pl.BlockSpec(memory_space=pltpu.MemorySpace.SMEM)

    # No grid: every operand is a single full-array block (total < 120 KiB resident),
    # so there is nothing to pipeline and no per-step grid overhead.
    return pl.pallas_call(
        _decoder_kernel,
        out_shape=(
            jax.ShapeDtypeStruct((B, V), jnp.float32),                # prediction
            jax.ShapeDtypeStruct((L, B, H), jnp.float32),             # new hidden
            jax.ShapeDtypeStruct((L, B, H), jnp.float32),             # new cell
        ),
        in_specs=[smem, vmem, vmem, vmem, vmem],
        out_specs=(vmem, vmem, vmem),
        # Recurrent state updated through its existing buffers:
        # input 3 (hidden) -> output 1, input 4 (cell) -> output 2.
        input_output_aliases={3: 1, 4: 2},
    )(tok, prep["w_pack"], prep["head"], hidden, cell)


def _reference(tokens, hidden, cell, p):
    """Pure-JAX reference mirroring PyTorch Decoder.forward (dropout = identity)."""
    H = HID_DIM
    x = p["embedding"][tokens]                                        # [B, E]
    hs, cs = [], []
    for l in range(N_LAYERS):
        h, c = hidden[l], cell[l]
        gates = x @ p["w_ih"][l].T + p["b_ih"][l] + h @ p["w_hh"][l].T + p["b_hh"][l]
        i_g = jax.nn.sigmoid(gates[:, 0 * H:1 * H])
        f_g = jax.nn.sigmoid(gates[:, 1 * H:2 * H])
        g_g = jnp.tanh(gates[:, 2 * H:3 * H])
        o_g = jax.nn.sigmoid(gates[:, 3 * H:4 * H])
        c = f_g * c + i_g * g_g
        h = o_g * jnp.tanh(c)
        x = h
        hs.append(h)
        cs.append(c)
    pred = x @ p["w_out"].T + p["b_out"]
    return pred, jnp.stack(hs), jnp.stack(cs)


def _init_params(key):
    """Deterministic synthetic parameters with the shapes nn.Embedding/nn.LSTM/nn.Linear imply."""
    ks = jax.random.split(key, 8)
    s = 0.1
    return {
        "embedding": s * jax.random.normal(ks[0], (OUTPUT_DIM, EMB_DIM), jnp.float32),
        # nn.LSTM: weight_ih_l{k} is [4H, E] for k=0 and [4H, H] otherwise (E == H here).
        "w_ih": s * jax.random.normal(ks[1], (N_LAYERS, 4 * HID_DIM, EMB_DIM), jnp.float32),
        "w_hh": s * jax.random.normal(ks[2], (N_LAYERS, 4 * HID_DIM, HID_DIM), jnp.float32),
        "b_ih": s * jax.random.normal(ks[3], (N_LAYERS, 4 * HID_DIM), jnp.float32),
        "b_hh": s * jax.random.normal(ks[4], (N_LAYERS, 4 * HID_DIM), jnp.float32),
        "w_out": s * jax.random.normal(ks[5], (OUTPUT_DIM, HID_DIM), jnp.float32),
        "b_out": s * jax.random.normal(ks[6], (OUTPUT_DIM,), jnp.float32),
    }


if __name__ == "__main__":
    key = jax.random.PRNGKey(0)
    k_tok, k_h, k_c, k_p = jax.random.split(key, 4)

    params = _init_params(k_p)
    prep = prepare_params(params)          # one-time weight layout prep
    tokens = jax.random.randint(k_tok, (BATCH,), 0, OUTPUT_DIM, dtype=jnp.int32)
    hidden = jax.random.normal(k_h, (N_LAYERS, BATCH, HID_DIM), jnp.float32)
    cell   = jax.random.normal(k_c, (N_LAYERS, BATCH, HID_DIM), jnp.float32)

    pred, h_new, c_new = jax.block_until_ready(
        decoder_forward(tokens, hidden, cell, prep)
    )

    r_pred, r_h, r_c = _reference(tokens, hidden, cell, params)
    assert jnp.allclose(pred, r_pred, atol=1e-5, rtol=1e-5)
    assert jnp.allclose(h_new, r_h, atol=1e-5, rtol=1e-5)
    assert jnp.allclose(c_new, r_c, atol=1e-5, rtol=1e-5)

    print("KERNEL_OK")
</pallas_src>

<mosaic_0001>
module attributes {stable_mosaic.version = 11 : i64} {
  func.func @_decoder_kernel(%arg0: memref<8xi32, #tpu.memory_space<smem>>, %arg1: memref<176x128xf32, #tpu.memory_space<vmem>>, %arg2: memref<40x64xf32, #tpu.memory_space<vmem>>, %arg3: memref<2x8x32xf32, #tpu.memory_space<vmem>>, %arg4: memref<2x8x32xf32, #tpu.memory_space<vmem>>, %arg5: memref<8x64xf32, #tpu.memory_space<vmem>>, %arg6: memref<2x8x32xf32, #tpu.memory_space<vmem>>, %arg7: memref<2x8x32xf32, #tpu.memory_space<vmem>>) attributes {dimension_semantics = [], scalar_prefetch = 0 : i64, scratch_operands = 0 : i64, tpu.core_type = #tpu.core_type<tc>} {
    %c96 = arith.constant 96 : index
    %c0 = arith.constant 0 : index
    %0 = vector.load %arg1[%c96, %c0] : memref<176x128xf32, #tpu.memory_space<vmem>>, vector<32x128xf32>
    %c160 = arith.constant 160 : index
    %c0_0 = arith.constant 0 : index
    %1 = vector.load %arg1[%c160, %c0_0] : memref<176x128xf32, #tpu.memory_space<vmem>>, vector<8x128xf32>
    %c0_1 = arith.constant 0 : index
    %c0_2 = arith.constant 0 : index
    %c0_3 = arith.constant 0 : index
    %2 = vector.load %arg3[%c0_1, %c0_2, %c0_3] : memref<2x8x32xf32, #tpu.memory_space<vmem>>, vector<1x8x32xf32>
    %3 = vector.shape_cast %2 : vector<1x8x32xf32> to vector<8x32xf32>
    %cst = arith.constant dense<0.000000e+00> : vector<8x128xf32>
    %4 = tpu.matmul %3, %0, %cst {dimension_numbers = #tpu.dot_dimension_numbers<[1], [0], [0], [1], [0, 0, 1, 1], [], []>} : vector<8x32xf32>, vector<32x128xf32>, vector<8x128xf32> -> vector<8x128xf32>
    %5 = arith.addf %4, %1 : vector<8x128xf32>
    %c128 = arith.constant 128 : index
    %c0_4 = arith.constant 0 : index
    %6 = vector.load %arg1[%c128, %c0_4] : memref<176x128xf32, #tpu.memory_space<vmem>>, vector<32x128xf32>
    %c168 = arith.constant 168 : index
    %c0_5 = arith.constant 0 : index
    %7 = vector.load %arg1[%c168, %c0_5] : memref<176x128xf32, #tpu.memory_space<vmem>>, vector<8x128xf32>
    %c1 = arith.constant 1 : index
    %c0_6 = arith.constant 0 : index
    %c0_7 = arith.constant 0 : index
    %8 = vector.load %arg3[%c1, %c0_6, %c0_7] : memref<2x8x32xf32, #tpu.memory_space<vmem>>, vector<1x8x32xf32>
    %9 = vector.shape_cast %8 : vector<1x8x32xf32> to vector<8x32xf32>
    %cst_8 = arith.constant dense<0.000000e+00> : vector<8x128xf32>
    %10 = tpu.matmul %9, %6, %cst_8 {dimension_numbers = #tpu.dot_dimension_numbers<[1], [0], [0], [1], [0, 0, 1, 1], [], []>} : vector<8x32xf32>, vector<32x128xf32>, vector<8x128xf32> -> vector<8x128xf32>
    %11 = arith.addf %10, %7 : vector<8x128xf32>
    %12 = tpu.iota {dimensions = array<i32: 1>} : vector<8x64xi32>
    %13 = tpu.iota {dimensions = array<i32: 0>} : vector<8x64xi32>
    %cst_9 = arith.constant 0.000000e+00 : f32
    %14 = vector.broadcast %cst_9 : f32 to vector<8x64xf32>
    %c0_i32 = arith.constant 0 : i32
    %15 = vector.broadcast %c0_i32 : i32 to vector<8x64xi32>
    %16 = arith.cmpi eq, %13, %15 : vector<8x64xi32>
    %c0_10 = arith.constant 0 : index
    %17 = memref.load %arg0[%c0_10] : memref<8xi32, #tpu.memory_space<smem>>
    %18 = vector.broadcast %17 : i32 to vector<8x64xi32>
    %19 = arith.cmpi eq, %12, %18 : vector<8x64xi32>
    %20 = arith.andi %16, %19 : vector<8x64xi1>
    %cst_11 = arith.constant 1.000000e+00 : f32
    %21 = vector.broadcast %cst_11 : f32 to vector<8x64xf32>
    %22 = arith.select %20, %21, %14 : vector<8x64xi1>, vector<8x64xf32>
    %c1_i32 = arith.constant 1 : i32
    %23 = vector.broadcast %c1_i32 : i32 to vector<8x64xi32>
    %24 = arith.cmpi eq, %13, %23 : vector<8x64xi32>
    %c1_12 = arith.constant 1 : index
    %25 = memref.load %arg0[%c1_12] : memref<8xi32, #tpu.memory_space<smem>>
    %26 = vector.broadcast %25 : i32 to vector<8x64xi32>
    %27 = arith.cmpi eq, %12, %26 : vector<8x64xi32>
    %28 = arith.andi %24, %27 : vector<8x64xi1>
    %cst_13 = arith.constant 1.000000e+00 : f32
    %29 = vector.broadcast %cst_13 : f32 to vector<8x64xf32>
    %30 = arith.select %28, %29, %22 : vector<8x64xi1>, vector<8x64xf32>
    %c2_i32 = arith.constant 2 : i32
    %31 = vector.broadcast %c2_i32 : i32 to vector<8x64xi32>
    %32 = arith.cmpi eq, %13, %31 : vector<8x64xi32>
    %c2 = arith.constant 2 : index
    %33 = memref.load %arg0[%c2] : memref<8xi32, #tpu.memory_space<smem>>
    %34 = vector.broadcast %33 : i32 to vector<8x64xi32>
    %35 = arith.cmpi eq, %12, %34 : vector<8x64xi32>
    %36 = arith.andi %32, %35 : vector<8x64xi1>
    %cst_14 = arith.constant 1.000000e+00 : f32
    %37 = vector.broadcast %cst_14 : f32 to vector<8x64xf32>
    %38 = arith.select %36, %37, %30 : vector<8x64xi1>, vector<8x64xf32>
    %c3_i32 = arith.constant 3 : i32
    %39 = vector.broadcast %c3_i32 : i32 to vector<8x64xi32>
    %40 = arith.cmpi eq, %13, %39 : vector<8x64xi32>
    %c3 = arith.constant 3 : index
    %41 = memref.load %arg0[%c3] : memref<8xi32, #tpu.memory_space<smem>>
    %42 = vector.broadcast %41 : i32 to vector<8x64xi32>
    %43 = arith.cmpi eq, %12, %42 : vector<8x64xi32>
    %44 = arith.andi %40, %43 : vector<8x64xi1>
    %cst_15 = arith.constant 1.000000e+00 : f32
    %45 = vector.broadcast %cst_15 : f32 to vector<8x64xf32>
    %46 = arith.select %44, %45, %38 : vector<8x64xi1>, vector<8x64xf32>
    %c4_i32 = arith.constant 4 : i32
    %47 = vector.broadcast %c4_i32 : i32 to vector<8x64xi32>
    %48 = arith.cmpi eq, %13, %47 : vector<8x64xi32>
    %c4 = arith.constant 4 : index
    %49 = memref.load %arg0[%c4] : memref<8xi32, #tpu.memory_space<smem>>
    %50 = vector.broadcast %49 : i32 to vector<8x64xi32>
    %51 = arith.cmpi eq, %12, %50 : vector<8x64xi32>
    %52 = arith.andi %48, %51 : vector<8x64xi1>
    %cst_16 = arith.constant 1.000000e+00 : f32
    %53 = vector.broadcast %cst_16 : f32 to vector<8x64xf32>
    %54 = arith.select %52, %53, %46 : vector<8x64xi1>, vector<8x64xf32>
    %c5_i32 = arith.constant 5 : i32
    %55 = vector.broadcast %c5_i32 : i32 to vector<8x64xi32>
    %56 = arith.cmpi eq, %13, %55 : vector<8x64xi32>
    %c5 = arith.constant 5 : index
    %57 = memref.load %arg0[%c5] : memref<8xi32, #tpu.memory_space<smem>>
    %58 = vector.broadcast %57 : i32 to vector<8x64xi32>
    %59 = arith.cmpi eq, %12, %58 : vector<8x64xi32>
    %60 = arith.andi %56, %59 : vector<8x64xi1>
    %cst_17 = arith.constant 1.000000e+00 : f32
    %61 = vector.broadcast %cst_17 : f32 to vector<8x64xf32>
    %62 = arith.select %60, %61, %54 : vector<8x64xi1>, vector<8x64xf32>
    %c6_i32 = arith.constant 6 : i32
    %63 = vector.broadcast %c6_i32 : i32 to vector<8x64xi32>
    %64 = arith.cmpi eq, %13, %63 : vector<8x64xi32>
    %c6 = arith.constant 6 : index
    %65 = memref.load %arg0[%c6] : memref<8xi32, #tpu.memory_space<smem>>
    %66 = vector.broadcast %65 : i32 to vector<8x64xi32>
    %67 = arith.cmpi eq, %12, %66 : vector<8x64xi32>
    %68 = arith.andi %64, %67 : vector<8x64xi1>
    %cst_18 = arith.constant 1.000000e+00 : f32
    %69 = vector.broadcast %cst_18 : f32 to vector<8x64xf32>
    %70 = arith.select %68, %69, %62 : vector<8x64xi1>, vector<8x64xf32>
    %c7_i32 = arith.constant 7 : i32
    %71 = vector.broadcast %c7_i32 : i32 to vector<8x64xi32>
    %72 = arith.cmpi eq, %13, %71 : vector<8x64xi32>
    %c7 = arith.constant 7 : index
    %73 = memref.load %arg0[%c7] : memref<8xi32, #tpu.memory_space<smem>>
    %74 = vector.broadcast %73 : i32 to vector<8x64xi32>
    %75 = arith.cmpi eq, %12, %74 : vector<8x64xi32>
    %76 = arith.andi %72, %75 : vector<8x64xi1>
    %cst_19 = arith.constant 1.000000e+00 : f32
    %77 = vector.broadcast %cst_19 : f32 to vector<8x64xf32>
    %78 = arith.select %76, %77, %70 : vector<8x64xi1>, vector<8x64xf32>
    %c0_20 = arith.constant 0 : index
    %c0_21 = arith.constant 0 : index
    %79 = vector.load %arg1[%c0_20, %c0_21] : memref<176x128xf32, #tpu.memory_space<vmem>>, vector<64x128xf32>
    %cst_22 = arith.constant dense<0.000000e+00> : vector<8x128xf32>
    %80 = tpu.matmul %78, %79, %cst_22 {dimension_numbers = #tpu.dot_dimension_numbers<[1], [0], [0], [1], [0, 0, 1, 1], [], []>} : vector<8x64xf32>, vector<64x128xf32>, vector<8x128xf32> -> vector<8x128xf32>
    %81 = arith.addf %80, %5 : vector<8x128xf32>
    %82 = arith.negf %81 : vector<8x128xf32>
    %83 = math.exp %82 : vector<8x128xf32>
    %cst_23 = arith.constant 1.000000e+00 : f32
    %84 = vector.broadcast %cst_23 : f32 to vector<8x128xf32>
    %85 = arith.addf %84, %83 : vector<8x128xf32>
    %86 = arith.divf %84, %85 : vector<8x128xf32>
    %87 = math.tanh %81 : vector<8x128xf32>
    %88 = vector.extract_strided_slice %86 {offsets = [0, 0], sizes = [8, 32], strides = [1, 1]} : vector<8x128xf32> to vector<8x32xf32>
    %89 = vector.extract_strided_slice %86 {offsets = [0, 32], sizes = [8, 32], strides = [1, 1]} : vector<8x128xf32> to vector<8x32xf32>
    %90 = vector.extract_strided_slice %87 {offsets = [0, 64], sizes = [8, 32], strides = [1, 1]} : vector<8x128xf32> to vector<8x32xf32>
    %91 = vector.extract_strided_slice %86 {offsets = [0, 96], sizes = [8, 32], strides = [1, 1]} : vector<8x128xf32> to vector<8x32xf32>
    %c0_24 = arith.constant 0 : index
    %c0_25 = arith.constant 0 : index
    %c0_26 = arith.constant 0 : index
    %92 = vector.load %arg4[%c0_24, %c0_25, %c0_26] : memref<2x8x32xf32, #tpu.memory_space<vmem>>, vector<1x8x32xf32>
    %93 = vector.shape_cast %92 : vector<1x8x32xf32> to vector<8x32xf32>
    %94 = arith.mulf %89, %93 : vector<8x32xf32>
    %95 = arith.mulf %88, %90 : vector<8x32xf32>
    %96 = arith.addf %94, %95 : vector<8x32xf32>
    %97 = math.tanh %96 : vector<8x32xf32>
    %98 = arith.mulf %91, %97 : vector<8x32xf32>
    %c0_27 = arith.constant 0 : index
    %c0_28 = arith.constant 0 : index
    %c0_29 = arith.constant 0 : index
    %99 = vector.load %arg6[%c0_27, %c0_28, %c0_29] : memref<2x8x32xf32, #tpu.memory_space<vmem>>, vector<1x8x32xf32>
    %100 = vector.shape_cast %99 : vector<1x8x32xf32> to vector<8x32xf32>
    %101 = vector.shape_cast %98 : vector<8x32xf32> to vector<1x8x32xf32>
    tpu.vector_store %arg6[%c0_27, %c0_28, %c0_29], %101 {strides = array<i32>} : memref<2x8x32xf32, #tpu.memory_space<vmem>>, vector<1x8x32xf32>,
    %c0_30 = arith.constant 0 : index
    %c0_31 = arith.constant 0 : index
    %c0_32 = arith.constant 0 : index
    %102 = vector.load %arg7[%c0_30, %c0_31, %c0_32] : memref<2x8x32xf32, #tpu.memory_space<vmem>>, vector<1x8x32xf32>
    %103 = vector.shape_cast %102 : vector<1x8x32xf32> to vector<8x32xf32>
    %104 = vector.shape_cast %96 : vector<8x32xf32> to vector<1x8x32xf32>
    tpu.vector_store %arg7[%c0_30, %c0_31, %c0_32], %104 {strides = array<i32>} : memref<2x8x32xf32, #tpu.memory_space<vmem>>, vector<1x8x32xf32>,
    %c64 = arith.constant 64 : index
    %c0_33 = arith.constant 0 : index
    %105 = vector.load %arg1[%c64, %c0_33] : memref<176x128xf32, #tpu.memory_space<vmem>>, vector<32x128xf32>
    %cst_34 = arith.constant dense<0.000000e+00> : vector<8x128xf32>
    %106 = tpu.matmul %98, %105, %cst_34 {dimension_numbers = #tpu.dot_dimension_numbers<[1], [0], [0], [1], [0, 0, 1, 1], [], []>} : vector<8x32xf32>, vector<32x128xf32>, vector<8x128xf32> -> vector<8x128xf32>
    %107 = arith.addf %106, %11 : vector<8x128xf32>
    %108 = arith.negf %107 : vector<8x128xf32>
    %109 = math.exp %108 : vector<8x128xf32>
    %cst_35 = arith.constant 1.000000e+00 : f32
    %110 = vector.broadcast %cst_35 : f32 to vector<8x128xf32>
    %111 = arith.addf %110, %109 : vector<8x128xf32>
    %112 = arith.divf %110, %111 : vector<8x128xf32>
    %113 = math.tanh %107 : vector<8x128xf32>
    %114 = vector.extract_strided_slice %112 {offsets = [0, 0], sizes = [8, 32], strides = [1, 1]} : vector<8x128xf32> to vector<8x32xf32>
    %115 = vector.extract_strided_slice %112 {offsets = [0, 32], sizes = [8, 32], strides = [1, 1]} : vector<8x128xf32> to vector<8x32xf32>
    %116 = vector.extract_strided_slice %113 {offsets = [0, 64], sizes = [8, 32], strides = [1, 1]} : vector<8x128xf32> to vector<8x32xf32>
    %117 = vector.extract_strided_slice %112 {offsets = [0, 96], sizes = [8, 32], strides = [1, 1]} : vector<8x128xf32> to vector<8x32xf32>
    %c1_36 = arith.constant 1 : index
    %c0_37 = arith.constant 0 : index
    %c0_38 = arith.constant 0 : index
    %118 = vector.load %arg4[%c1_36, %c0_37, %c0_38] : memref<2x8x32xf32, #tpu.memory_space<vmem>>, vector<1x8x32xf32>
    %119 = vector.shape_cast %118 : vector<1x8x32xf32> to vector<8x32xf32>
    %120 = arith.mulf %115, %119 : vector<8x32xf32>
    %121 = arith.mulf %114, %116 : vector<8x32xf32>
    %122 = arith.addf %120, %121 : vector<8x32xf32>
    %123 = math.tanh %122 : vector<8x32xf32>
    %124 = arith.mulf %117, %123 : vector<8x32xf32>
    %c1_39 = arith.constant 1 : index
    %c0_40 = arith.constant 0 : index
    %c0_41 = arith.constant 0 : index
    %125 = vector.load %arg6[%c1_39, %c0_40, %c0_41] : memref<2x8x32xf32, #tpu.memory_space<vmem>>, vector<1x8x32xf32>
    %126 = vector.shape_cast %125 : vector<1x8x32xf32> to vector<8x32xf32>
    %127 = vector.shape_cast %124 : vector<8x32xf32> to vector<1x8x32xf32>
    tpu.vector_store %arg6[%c1_39, %c0_40, %c0_41], %127 {strides = array<i32>} : memref<2x8x32xf32, #tpu.memory_space<vmem>>, vector<1x8x32xf32>,
    %c1_42 = arith.constant 1 : index
    %c0_43 = arith.constant 0 : index
    %c0_44 = arith.constant 0 : index
    %128 = vector.load %arg7[%c1_42, %c0_43, %c0_44] : memref<2x8x32xf32, #tpu.memory_space<vmem>>, vector<1x8x32xf32>
    %129 = vector.shape_cast %128 : vector<1x8x32xf32> to vector<8x32xf32>
    %130 = vector.shape_cast %122 : vector<8x32xf32> to vector<1x8x32xf32>
    tpu.vector_store %arg7[%c1_42, %c0_43, %c0_44], %130 {strides = array<i32>} : memref<2x8x32xf32, #tpu.memory_space<vmem>>, vector<1x8x32xf32>,
    %c0_45 = arith.constant 0 : index
    %c0_46 = arith.constant 0 : index
    %131 = vector.load %arg2[%c0_45, %c0_46] : memref<40x64xf32, #tpu.memory_space<vmem>>, vector<32x64xf32>
    %c32 = arith.constant 32 : index
    %c0_47 = arith.constant 0 : index
    %132 = vector.load %arg2[%c32, %c0_47] : memref<40x64xf32, #tpu.memory_space<vmem>>, vector<8x64xf32>
    %cst_48 = arith.constant dense<0.000000e+00> : vector<8x64xf32>
    %133 = tpu.matmul %124, %131, %cst_48 {dimension_numbers = #tpu.dot_dimension_numbers<[1], [0], [0], [1], [0, 0, 1, 1], [], []>} : vector<8x32xf32>, vector<32x64xf32>, vector<8x64xf32> -> vector<8x64xf32>
    %134 = arith.addf %133, %132 : vector<8x64xf32>
    %c0_49 = arith.constant 0 : index
    %c0_50 = arith.constant 0 : index
    %135 = vector.load %arg5[%c0_49, %c0_50] : memref<8x64xf32, #tpu.memory_space<vmem>>, vector<8x64xf32>
    tpu.vector_store %arg5[%c0_49, %c0_50], %134 {strides = array<i32>} : memref<8x64xf32, #tpu.memory_space<vmem>>, vector<8x64xf32>,
    return
  }
}

</mosaic_0001>

<bundles_post_ra>
// kernel: decoder_forward.1
= control target key start
LH: loop header
LB: loop body
LE: loop exit
PB: predicated region body
PF: predicated region fallthrough
CT: control target
= control target key end

     0   :  { %13 = vsyncpa [#allocation5], 0  ;;  %s1236_s0 = inlined_call_operand.vmem [shape: s32[8], index: 0, kind: input, shape index: {}]   ;;  %s1237_s1 = inlined_call_operand.hbm [shape: f32[176,128], index: 1, kind: input, shape index: {}]   ;;  %s1238_s2 = inlined_call_operand.vmem [shape: f32[40,64], index: 2, kind: input, shape index: {}]   ;;  %s1239_s3 = inlined_call_operand.hbm [shape: f32[2,8,32], index: 3, kind: input, shape index: {}, may-alias: {3,6}]   ;;  %s1240_s4 = inlined_call_operand.hbm [shape: f32[2,8,32], index: 4, kind: input, shape index: {}, may-alias: {4,7}]   ;;  %s1241_s5 = inlined_call_operand.hbm [shape: f32[8,64], index: 5, kind: output, shape index: {0}]   ;;  %s1242_s6 = inlined_call_operand.hbm [shape: f32[2,8,32], index: 6, kind: output, shape index: {1}, may-alias: {3,6}]   ;;  %s1243_s7 = inlined_call_operand.hbm [shape: f32[2,8,32], index: 7, kind: output, shape index: {2}, may-alias: {4,7}]  }
   0x1   :  { %14 = vsyncpa [#allocation3], 0 }
   0x2   :  { %15 = vsyncpa [#allocation8], 0 }
   0x3   :  { %16 = vsyncpa [#allocation4], 0 }
   0x4   :  { %17 = vsyncpa [#allocation12], 0  ;;  %s24_s26 = sshll.u32 %s1236_s0, 4  ;;  %s989_s27 = smov [#allocation7]   ;;  %s25_s26 = int_to_ptr.vmem [resolvable:$true] %s24_s26 }
   0x5   :  { %s47_s28 = sshll.u32 %s989_s27, 4  ;;  %s835_s8 = scalar_lea.hbm %s1239_s3, 256  ;;  %s48_s28 = int_to_ptr.vmem [resolvable:$true] %s47_s28 }
   0x6   :  { %p836_p0 = scmp.ne.s32.totalorder %s1239_s3, %s835_s8  ;;  %p839_p1 = scmp.lt.u32.totalorder %s835_s8, %s1239_s3 }
   0x8   :  { %p841_p2 = pnand %p839_p1, %p836_p0 }
   0xa   :  { %844 = shalt.err (!%p841_p2)
}
   0xb   :  { %s845_s13 = scalar_lea.vmem %s48_s28, 256  ;;  %p850_p4 = scmp.lt.s32.totalorder %s48_s28, %s48_s28 }
   0xc   :  { %p846_p3 = scmp.ne.s32.totalorder %s48_s28, %s845_s13  ;;  %p851_p5 = scmp.lt.s32.totalorder %s845_s13, %s845_s13 }
   0xe   :  { %p852_p6 = por %p851_p5, %p850_p4 }
  0x10   :  { %p853_p7 = pnand %p852_p6, %p846_p3 }
  0x12   :  { %856 = shalt.err (!%p853_p7)
}
  0x13   :  { %s990_s0 = smov 128   ;;  %s991_s14 = smov 8  }
  0x14   :  { %53 = dma.hbm_to_vmem [thread:$0]  %s1239_s3, 256, %s48_s28, [#allocation8], %s990_s0, %s990_s0, %s991_s14  }
  0x15   :  { %s857_s17 = scalar_lea.vmem %s25_s26, 16  ;;  %p862_p9 = scmp.lt.s32.totalorder %s25_s26, %s25_s26 }
  0x16   :  { %p858_p8 = scmp.ne.s32.totalorder %s25_s26, %s857_s17  ;;  %p863_p10 = scmp.lt.s32.totalorder %s857_s17, %s857_s17 }
  0x18   :  { %p864_p11 = por %p863_p10, %p862_p9 }
  0x1a   :  { %p865_p12 = pnand %p864_p11, %p858_p8 }
  0x1c   :  { %868 = shalt.err (!%p865_p12)
}
  0x1d   :  { %s992_s18 = smov [#allocation2]   ;;  %s993_s19 = smov [#allocation6]  }
  0x1e   :  { %27 = dma.vmem_to_smem %s25_s26, 16, %s992_s18, [#allocation5]  }
  0x1f   :  { %s33_s20 = sshll.u32 %s993_s19, 4  ;;  %s994_s21 = smov [#allocation9]   ;;  %s34_s20 = int_to_ptr.vmem [resolvable:$true] %s33_s20 }
  0x20   :  { %s59_s22 = sshll.u32 %s994_s21, 4  ;;  %s869_s3 = scalar_lea.hbm %s1237_s1, 2816  ;;  %s1062_s22 = int_to_ptr.vmem [resolvable:$true] %s59_s22 }
  0x21   :  { %p870_p13 = scmp.ne.s32.totalorder %s1237_s1, %s869_s3  ;;  %p873_p0 = scmp.lt.u32.totalorder %s869_s3, %s1237_s1 }
  0x23   :  { %p875_p1 = pnand %p873_p0, %p870_p13 }
  0x25   :  { %878 = shalt.err (!%p875_p1)
}
  0x26   :  { %s879_s26 = scalar_lea.vmem %s34_s20, 2816  ;;  %p884_p3 = scmp.lt.s32.totalorder %s34_s20, %s34_s20 }
  0x27   :  { %p880_p2 = scmp.ne.s32.totalorder %s34_s20, %s879_s26  ;;  %p885_p4 = scmp.lt.s32.totalorder %s879_s26, %s879_s26 }
  0x29   :  { %p886_p5 = por %p885_p4, %p884_p3 }
  0x2b   :  { %p887_p6 = pnand %p886_p5, %p880_p2 }
  0x2d   :  { %890 = shalt.err (!%p887_p6)
}
  0x2e   :  { %39 = dma.hbm_to_vmem [thread:$0]  %s1237_s1, 2816, %s34_s20, [#allocation3], %s990_s0, %s990_s0, %s991_s14  }
  0x2f   :  { %s891_s11 = scalar_lea.hbm %s1240_s4, 256 }
  0x30   :  { %p892_p7 = scmp.ne.s32.totalorder %s1240_s4, %s891_s11  ;;  %p895_p8 = scmp.lt.u32.totalorder %s891_s11, %s1240_s4 }
  0x32   :  { %p897_p9 = pnand %p895_p8, %p892_p7 }
  0x34   :  { %900 = shalt.err (!%p897_p9)
}
  0x35   :  { %s901_s17 = scalar_lea.vmem %s1062_s22, 256  ;;  %p906_p11 = scmp.lt.s32.totalorder %s1062_s22, %s1062_s22 }
  0x36   :  { %p902_p10 = scmp.ne.s32.totalorder %s1062_s22, %s901_s17  ;;  %p907_p12 = scmp.lt.s32.totalorder %s901_s17, %s901_s17 }
  0x38   :  { %p908_p13 = por %p907_p12, %p906_p11 }
  0x3a   :  { %p909_p0 = pnand %p908_p13, %p902_p10 }
  0x3c   :  { %912 = shalt.err (!%p909_p0)
}
  0x3d   :  { %65 = dma.hbm_to_vmem [thread:$0]  %s1240_s4, 256, %s1062_s22, [#allocation8], %s990_s0, %s990_s0, %s991_s14  }
  0x3e   :  { %979 = dma.done.wait [#allocation5], 16  }
  0x3f   :  { %980 = vsyncadd [#allocation5], 4294967280 }
  0x40   :  { %981 = dma.done.wait [#allocation3], 2816  }
  0x41   :  { %982 = vsyncadd [#allocation3], 4294964480 }
  0x42   :  { %983 = dma.done.wait [#allocation8], 512  }
  0x43   :  { %984 = vsyncadd [#allocation8], 4294966784 }
  0x44   :  { %78 = sfence }
  0x45   :  { %v79_v0 = vld [vmem:[#allocation6 + $0x60] sm:$0xff]  ;;  %v80_v1 = vld [vmem:[#allocation6 + $0x68] sm:$0xff]  ;;  %v81_v2 = vld [vmem:[#allocation6 + $0x70] sm:$0xff]  ;;  %v239_v3 = vlaneseq  ;;  %v995_v4 = vmov 0.0|0.0   ;;  %vm996_vm0 = vmmov 0   ;;  %v997_v7 = vmov 0.0  }
  0x46   :  { %762 = vmatprep.subr.bf16.mxu0 %v995_v4  ;;  %v763_v5 = vpack.c.bf16 %v80_v1, %v79_v0  ;;  %v82_v6 = vld [vmem:[#allocation6 + $0x78] sm:$0xff]  ;;  %707 = vmatprep.mubr.msk.f32.mxu0 %vm996_vm0, %v997_v7  ;;  %s244_s4 = sld [smem:[#allocation2]]  ;;  %s658_s19 = sld [smem:[#allocation2 + $0x1]]  ;;  %v291_v10 = vld [vmem:[#allocation6] sm:$0xff]  ;;  %v292_v11 = vld [vmem:[#allocation6 + $0x8] sm:$0xff]  ;;  %vm85_vm2 = vcmask 261120  }
  0x47   :  { %v1102_v8 = vshrl.u32 %v239_v3, 7  ;;  %768 = vmatprep.subr.bf16.mxu1 %v995_v4  ;;  %718 = vmatprep.mubr.msk.f32.mxu1 %vm996_vm0, %v997_v7  ;;  %v766_v9 = vpack.c.bf16 %v82_v6, %v81_v2  ;;  %v240_v12 = vand.u32 127, %v239_v3  ;;  %s659_s20 = sld [smem:[#allocation2 + $0x2]]  ;;  %v293_v13 = vld [vmem:[#allocation6 + $0x10] sm:$0xff]  ;;  %s1108_s21 = sld [smem:[#allocation2 + $0x3]]  ;;  %v294_v14 = vld [vmem:[#allocation6 + $0x18] sm:$0xff]  ;;  %v775_v16 = vpack.c.bf16 %v292_v11, %v291_v10 }
  0x48   :  { %764 = vmatpush3.bf16.msra.mxu0 %v763_v5  ;;  %s1110_s22 = sld [smem:[#allocation2 + $0x4]]  ;;  %s1113_s23 = sld [smem:[#allocation2 + $0x5]]  ;;  %v84_v15 = vld [vmem:[#allocation7] sm:$0xff]  ;;  %v778_v18 = vpack.c.bf16 %v294_v14, %v293_v13  ;;  %v295_v24 = vld [vmem:[#allocation6 + $0x20] sm:$0xff]  ;;  %v296_v25 = vld [vmem:[#allocation6 + $0x28] sm:$0xff] }
  0x49   :  { %765 = vmatprep.subr.bf16.mxu0 %v995_v4  ;;  %vm243_vm1 = vcmp.eq.s32.totalorder %v1102_v8, 0  ;;  %s1115_s24 = sld [smem:[#allocation2 + $0x6]]  ;;  %s1117_s3 = sld [smem:[#allocation2 + $0x7]]  ;;  %vm249_vm4 = vcmp.eq.s32.totalorder %v1102_v8, 1  ;;  %vm255_vm6 = vcmp.eq.s32.totalorder %v1102_v8, 2  ;;  %vm261_vm7 = vcmp.eq.s32.totalorder %v1102_v8, 3 }
  0x4a   :  { %vm267_vm9 = vcmp.eq.s32.totalorder %v1102_v8, 4  ;;  %vm273_vm12 = vcmp.eq.s32.totalorder %v1102_v8, 5  ;;  %v781_v32 = vpack.c.bf16 %v296_v25, %v295_v24  ;;  %v297_v34 = vld [vmem:[#allocation6 + $0x30] sm:$0xff]  ;;  %v298_v35 = vld [vmem:[#allocation6 + $0x38] sm:$0xff]  ;;  %v83_v40 = vld [vmem:[#allocation6 + $0xa0] sm:$0xff]  ;;  %s998_s25 = smov 64  }
  0x4b   :  { %v784_v37 = vpack.c.bf16 %v298_v35, %v297_v34  ;;  %v380_v45 = vld [vmem:[#allocation9] sm:$0xff]  ;;  %s999_s27 = smov 32   ;;  %v160_v57 = vld [vmem:[#allocation6 + $0x88] sm:$0xff]  ;;  %v161_v58 = vld [vmem:[#allocation6 + $0x90] sm:$0xff]  ;;  %s1000_s12 = smov 96  }
  0x4c   :  { %767 = vmatpush3.bf16.msra.mxu0 %v766_v9  ;;  %v245_v17 = vstv %s244_s4  ;;  %v251_v19 = vstv %s658_s19  ;;  %v159_v56 = vld [vmem:[#allocation6 + $0x80] sm:$0xff]  ;;  %v162_v60 = vld [vmem:[#allocation6 + $0x98] sm:$0xff]  ;;  %v413_v63 = vld [vmem:[#allocation6 + $0x48] sm:$0xff]  ;;  %s1001_s13 = smov [#allocation11]  }
  0x4d   :  { %774 = vmatprep.subr.bf16.mxu0 %v995_v4  ;;  %vm246_vm3 = vcmp.eq.s32.totalorder %v240_v12, %v245_v17  ;;  %vm252_vm8 = vcmp.eq.s32.totalorder %v240_v12, %v251_v19  ;;  %v257_v21 = vstv %s659_s20  ;;  %v263_v22 = vstv %s1108_s21  ;;  %v412_v62 = vld [vmem:[#allocation6 + $0x40] sm:$0xff]  ;;  %v165_v0 = vld [vmem:[#allocation7 + $0x8] sm:$0xff]  ;;  %v414_v2 = vld [vmem:[#allocation6 + $0x50] sm:$0xff]  ;;  %s623_s15 = sshll.u32 %s1001_s13, 4  ;;  %s624_s15 = int_to_ptr.vmem [resolvable:$true] %s623_s15 }
  0x4e   :  { %vm247_vm5 = vmand %vm243_vm1, %vm246_vm3  ;;  %vm258_vm11 = vcmp.eq.s32.totalorder %v240_v12, %v257_v21  ;;  %v269_v23 = vstv %s1110_s22  ;;  %vm264_vm14 = vcmp.eq.s32.totalorder %v240_v12, %v263_v22  ;;  %v275_v27 = vstv %s1113_s23  ;;  %v415_v3 = vld [vmem:[#allocation6 + $0x58] sm:$0xff]  ;;  %v496_v10 = vld [vmem:[#allocation9 + $0x8] sm:$0xff]  ;;  %s913_s16 = scalar_lea.vmem %s624_s15, 256  ;;  %p918_p2 = scmp.lt.s32.totalorder %s624_s15, %s624_s15 }
  0x4f   :  { %708 = vmatmul.mubr.msk.f32.vlgmr.msra.gmra.mrb[0].mxu0 %vm85_vm2, %v84_v15  ;;  %v248_v20 = vsel %vm247_vm5, 1.0, %v997_v7  ;;  %vm253_vm10 = vmand %vm249_vm4, %vm252_vm8  ;;  %vm270_vm15 = vcmp.eq.s32.totalorder %v240_v12, %v269_v23  ;;  %vm276_vm3 = vcmp.eq.s32.totalorder %v240_v12, %v275_v27  ;;  %v281_v29 = vstv %s1115_s24  ;;  %v531_v27 = vld [vmem:[%s1238_s2 + $0x8] sm:$0xff]  ;;  %p914_p1 = scmp.ne.s32.totalorder %s624_s15, %s913_s16  ;;  %p919_p3 = scmp.lt.s32.totalorder %s913_s16, %s913_s16 }
  0x50   :  { %776 = vmatpush3.bf16.msra.mxu0 %v775_v16  ;;  %737 = vmatprep.mubr.msk.f32.mxu0 %vm996_vm0, %v997_v7  ;;  %v254_v26 = vsel %vm253_vm10, 1.0, %v248_v20  ;;  %vm259_vm13 = vmand %vm255_vm6, %vm258_vm11  ;;  %vm279_vm5 = vcmp.eq.s32.totalorder %v1102_v8, 6  ;;  %vm282_vm8 = vcmp.eq.s32.totalorder %v240_v12, %v281_v29  ;;  %v287_v31 = vstv %s1117_s3 }
  0x51   :  { %777 = vmatprep.subr.bf16.mxu0 %v995_v4  ;;  %v260_v28 = vsel %vm259_vm13, 1.0, %v254_v26  ;;  %vm265_vm1 = vmand %vm261_vm7, %vm264_vm14  ;;  %vm285_vm10 = vcmp.eq.s32.totalorder %v1102_v8, 7  ;;  %vm288_vm11 = vcmp.eq.s32.totalorder %v240_v12, %v287_v31  ;;  %vm299_vm13 = vcmask 523264   ;;  %v163_v12 = vld [vmem:[#allocation6 + $0xa8] sm:$0xff]  ;;  %v530_v26 = vld [vmem:[%s1238_s2] sm:$0xff]  ;;  %p920_p4 = por %p919_p3, %p918_p2 }
  0x52   :  { %v266_v30 = vsel %vm265_vm1, 1.0, %v260_v28  ;;  %vm271_vm4 = vmand %vm267_vm9, %vm270_vm15  ;;  %v769_v59 = vpack.c.bf16 %v160_v57, %v159_v56  ;;  %v772_v61 = vpack.c.bf16 %v162_v60, %v161_v58  ;;  %v787_v1 = vpack.c.bf16 %v413_v63, %v412_v62  ;;  %v532_v28 = vld [vmem:[%s1238_s2 + $0x10] sm:$0xff] }
  0x53   :  { %v272_v33 = vsel %vm271_vm4, 1.0, %v266_v30  ;;  %vm277_vm6 = vmand %vm273_vm12, %vm276_vm3  ;;  %v790_v6 = vpack.c.bf16 %v415_v3, %v414_v2  ;;  %v793_v29 = vpack.c.bf16 %v531_v27, %v530_v26  ;;  %v533_v30 = vld [vmem:[%s1238_s2 + $0x18] sm:$0xff]  ;;  %p921_p5 = pnand %p920_p4, %p914_p1 }
  0x54   :  { %779 = vmatpush3.bf16.msra.mxu0 %v778_v18  ;;  %v278_v36 = vsel %vm277_vm6, 1.0, %v272_v33  ;;  %vm283_vm7 = vmand %vm279_vm5, %vm282_vm8  ;;  %770 = vmatpush3.bf16.msra.mxu1 %v769_v59  ;;  %v796_v31 = vpack.c.bf16 %v533_v30, %v532_v28 }
  0x55   :  { %780 = vmatprep.subr.bf16.mxu0 %v995_v4  ;;  %v284_v38 = vsel %vm283_vm7, 1.0, %v278_v36  ;;  %vm289_vm9 = vmand %vm285_vm10, %vm288_vm11  ;;  %771 = vmatprep.subr.bf16.mxu1 %v995_v4 }
  0x56   :  { %v290_v39 = vsel %vm289_vm9, 1.0, %v284_v38 }
  0x58   :  { %782 = vmatpush3.bf16.msra.mxu0 %v781_v32  ;;  %773 = vmatpush3.bf16.msra.mxu1 %v772_v61 }
  0x59   :  { %783 = vmatprep.subr.bf16.mxu0 %v995_v4  ;;  %786 = vmatprep.subr.bf16.mxu1 %v995_v4 }
  0x5b   :  { %719 = vmatmul.mubr.msk.f32.vlgmr.msra.gmra.mrb[0].mxu1 %vm85_vm2, %v165_v0 }
  0x5c   :  { %785 = vmatpush3.bf16.msra.mxu0 %v784_v37  ;;  %788 = vmatpush3.bf16.msra.mxu1 %v787_v1 }
  0x5d   :  { %789 = vmatprep.subr.bf16.mxu1 %v995_v4  ;;  %748 = vmatprep.mubr.msk.f32.mxu1 %vm996_vm0, %v997_v7 }
  0x5f   :  { %738 = vmatmul.mubr.msk.f32.vlgmr.msra.gmra.mrb[0].mxu0 %vm299_vm13, %v290_v39 }
  0x60   :  { %791 = vmatpush3.bf16.msra.mxu1 %v790_v6 }
  0x61   :  { %792 = vmatprep.subr.bf16.mxu1 %v995_v4 }
 0x132   :  { %v369_v41 = vpop.f32.mrb[0].mxu0 }
 0x133   :  { %v798_v42 = vadd.f32 %v369_v41, %v83_v40  ;;  %v739_v43 = vpop.f32.mrb[1].mxu0 }
 0x135   :  { %819 = vtanh.f32 %v798_v42  ;;  %v666_v46 = vmul.f32 -1.442695, %v798_v42 }
 0x137   :  { %821 = vpow2.f32 %v666_v46 }
 0x13f   :  { %v820_v44 = vpop.eup %819 }
 0x140   :  { %387 = vrot.lane.b32.xlu0 %v820_v44, %s998_s25 }
 0x141   :  { %v822_v47 = vpop.eup %821 }
 0x142   :  { %v376_v48 = vadd.f32 1.0, %v822_v47 }
 0x144   :  { %382 = vrot.lane.b32.xlu0 %v380_v45, %s999_s27  ;;  %823 = vrcp.f32 %v376_v48 }
 0x14e   :  { %v824_v49 = vpop.eup %823 }
 0x1b2   :  { %v388_v50 = vpop.permute.xlu0 %387 }
 0x1b3   :  { %v390_v51 = vmul.f32 %v824_v49, %v388_v50 }
 0x1b5   :  { %392 = vrot.lane.b32.xlu1 %v390_v51, %s999_s27 }
 0x1b6   :  { %v383_v52 = vpop.permute.xlu0 %382 }
 0x1b7   :  { %v385_v53 = vmul.f32 %v824_v49, %v383_v52 }
 0x227   :  { %v393_v54 = vpop.permute.xlu1 %392 }
 0x228   :  { %v1151_v55 = vadd.f32 %v393_v54, %v385_v53 }
 0x22a   :  { %825 = vtanh.f32 %v1151_v55 }
 0x234   :  { %v826_v5 = vpop.eup %825 }
 0x235   :  { %398 = vrot.lane.b32.xlu1 %v826_v5, %s998_s25 }
 0x2a7   :  { %v399_v8 = vpop.permute.xlu1 %398 }
 0x2a8   :  { %v401_v9 = vmul.f32 %v824_v49, %v399_v8 }
 0x2aa   :  { %403 = vrot.lane.b32.xlu0 %v401_v9, %s999_s27 }
 0x2ae   :  { %498 = vrot.lane.b32.xlu0 %v496_v10, %s999_s27 }
 0x31c   :  { %v404_v11 = vpop.permute.xlu0 %403 }
 0x31d   :  { %406 = vst.msk [vmem:[#allocation11] sm:$0xff] %vm85_vm2, %v404_v11  ;;  %749 = vmatmul.mubr.msk.f32.vlgmr.msra.gmra.mrb[0].mxu1 %vm85_vm2, %v404_v11 }
 0x31e   :  { %759 = vmatprep.mubr.msk.f32.mxu1 %vm996_vm0, %v997_v7  ;;  %794 = vmatpush3.bf16.msra.mxu1 %v793_v29 }
 0x31f   :  { %795 = vmatprep.subr.bf16.mxu1 %v995_v4 }
 0x320   :  { %v499_v23 = vpop.permute.xlu0 %498 }
 0x322   :  { %797 = vmatpush3.bf16.msra.mxu1 %v796_v31 }
 0x3f0   :  { %v484_v13 = vpop.f32.mrb[0].mxu1 }
 0x3f1   :  { %v799_v14 = vadd.f32 %v484_v13, %v163_v12  ;;  %v750_v15 = vpop.f32.mrb[1].mxu1 }
 0x3f3   :  { %827 = vtanh.f32 %v799_v14  ;;  %v668_v17 = vmul.f32 -1.442695, %v799_v14 }
 0x3f5   :  { %829 = vpow2.f32 %v668_v17 }
 0x3fd   :  { %v828_v16 = vpop.eup %827 }
 0x3fe   :  { %503 = vrot.lane.b32.xlu1 %v828_v16, %s998_s25 }
 0x3ff   :  { %v830_v18 = vpop.eup %829 }
 0x400   :  { %v491_v19 = vadd.f32 1.0, %v830_v18 }
 0x402   :  { %831 = vrcp.f32 %v491_v19 }
 0x40c   :  { %v832_v20 = vpop.eup %831 }
 0x40d   :  { %v501_v7 = vmul.f32 %v832_v20, %v499_v23 }
 0x470   :  { %v504_v21 = vpop.permute.xlu1 %503 }
 0x471   :  { %v506_v22 = vmul.f32 %v832_v20, %v504_v21 }
 0x473   :  { %508 = vrot.lane.b32.xlu1 %v506_v22, %s999_s27 }
 0x4e5   :  { %v509_v24 = vpop.permute.xlu1 %508 }
 0x4e6   :  { %v511_v25 = vadd.f32 %v509_v24, %v501_v7 }
 0x4e8   :  { %833 = vtanh.f32 %v511_v25 }
 0x4f2   :  { %v834_v32 = vpop.eup %833 }
 0x4f3   :  { %514 = vrot.lane.b32.xlu0 %v834_v32, %s998_s25 }
 0x4f7   :  { %408 = vrot.lane.b32.xlu0 %v1151_v55, %s1000_s12 }
 0x565   :  { %v515_v33 = vpop.permute.xlu0 %514 }
 0x566   :  { %v517_v34 = vmul.f32 %v832_v20, %v515_v33 }
 0x568   :  { %519 = vrot.lane.b32.xlu1 %v517_v34, %s999_s27 }
 0x569   :  { %v409_v35 = vpop.permute.xlu0 %408 }
 0x56a   :  { %411 = vst.msk [vmem:[#allocation13] sm:$0xff] %vm85_vm2, %v409_v35 }
 0x56c   :  { %525 = vrot.lane.b32.xlu1 %v511_v25, %s1000_s12 }
 0x5da   :  { %v520_v36 = vpop.permute.xlu1 %519 }
 0x5db   :  { %523 = vst.msk [vmem:[#allocation11 + $0x8] sm:$0xff] %vm85_vm2, %v520_v36  ;;  %760 = vmatmul.mubr.msk.f32.vlgmr.msra.gmra.mrb[2].mxu1 %vm85_vm2, %v520_v36 }
 0x5de   :  { %v526_v4 = vpop.permute.xlu1 %525 }
 0x5df   :  { %529 = vst.msk [vmem:[#allocation13 + $0x8] sm:$0xff] %vm85_vm2, %v526_v4 }
 0x5e0   :  { %924 = shalt.err (!%p921_p5)
}
 0x5e1   :  { %s925_s18 = scalar_lea.hbm %s1242_s6, 256 }
 0x5e2   :  { %p926_p6 = scmp.ne.s32.totalorder %s1242_s6, %s925_s18  ;;  %p929_p7 = scmp.lt.u32.totalorder %s925_s18, %s1242_s6 }
 0x5e4   :  { %p931_p8 = pnand %p929_p7, %p926_p6 }
 0x5e6   :  { %934 = shalt.err (!%p931_p8)
}
 0x5e7   :  { %629 = dma.vmem_to_hbm [thread:$0]  %s624_s15, 256, %s1242_s6, [#allocation12], %s990_s0, %s990_s0, %s991_s14  }
 0x5e8   :  { %s1002_s24 = smov [#allocation13]  }
 0x5e9   :  { %s635_s3 = sshll.u32 %s1002_s24, 4  ;;  %s636_s3 = int_to_ptr.vmem [resolvable:$true] %s635_s3 }
 0x5ea   :  { %s935_s25 = scalar_lea.vmem %s636_s3, 256  ;;  %p940_p10 = scmp.lt.s32.totalorder %s636_s3, %s636_s3 }
 0x5eb   :  { %p936_p9 = scmp.ne.s32.totalorder %s636_s3, %s935_s25  ;;  %p941_p11 = scmp.lt.s32.totalorder %s935_s25, %s935_s25 }
 0x5ed   :  { %p942_p12 = por %p941_p11, %p940_p10 }
 0x5ef   :  { %p943_p13 = pnand %p942_p12, %p936_p9 }
 0x5f1   :  { %946 = shalt.err (!%p943_p13)
}
 0x5f2   :  { %s947_s29 = scalar_lea.hbm %s1243_s7, 256 }
 0x5f3   :  { %p948_p0 = scmp.ne.s32.totalorder %s1243_s7, %s947_s29  ;;  %p951_p1 = scmp.lt.u32.totalorder %s947_s29, %s1243_s7 }
 0x5f5   :  { %p953_p2 = pnand %p951_p1, %p948_p0 }
 0x5f7   :  { %956 = shalt.err (!%p953_p2)
}
 0x5f8   :  { %641 = dma.vmem_to_hbm [thread:$0]  %s636_s3, 256, %s1243_s7, [#allocation12], %s990_s0, %s990_s0, %s991_s14  }
 0x5f9   :  { %v534_v37 = vld [vmem:[%s1238_s2 + $0x20] sm:$0xff]  ;;  %s1003_s13 = smov [#allocation10]  }
 0x5fa   :  { %s614_s15 = sshll.u32 %s1003_s13, 4  ;;  %s615_s15 = int_to_ptr.vmem [resolvable:$true] %s614_s15 }
 0x5fb   :  { %s957_s16 = scalar_lea.vmem %s615_s15, 128  ;;  %p962_p4 = scmp.lt.s32.totalorder %s615_s15, %s615_s15 }
 0x5fc   :  { %p958_p3 = scmp.ne.s32.totalorder %s615_s15, %s957_s16  ;;  %p963_p5 = scmp.lt.s32.totalorder %s957_s16, %s957_s16 }
 0x5fe   :  { %p964_p6 = por %p963_p5, %p962_p4 }
 0x600   :  { %p965_p7 = pnand %p964_p6, %p958_p3 }
 0x6ae   :  { %v603_v38 = vpop.f32.mrb[2].mxu1 }
 0x6af   :  { %v604_v39 = vadd.f32 %v603_v38, %v534_v37  ;;  %v761_v40 = vpop.f32.mrb[3].mxu1 }
 0x6b1   :  { %607 = vst.msk [vmem:[#allocation10] sm:$0xff] %vm299_vm13, %v604_v39 }
 0x6b2   :  { %968 = shalt.err (!%p965_p7)
}
 0x6b3   :  { %s969_s14 = scalar_lea.hbm %s1241_s5, 128 }
 0x6b4   :  { %p970_p8 = scmp.ne.s32.totalorder %s1241_s5, %s969_s14  ;;  %p973_p9 = scmp.lt.u32.totalorder %s969_s14, %s1241_s5 }
 0x6b6   :  { %p975_p10 = pnand %p973_p9, %p970_p8 }
 0x6b8   :  { %978 = shalt.err (!%p975_p10)
}
 0x6b9   :  { %617 = dma.vmem_to_hbm [thread:$0]  %s615_s15, 128, %s1241_s5, [#allocation4]  }
 0x6ba   :  { %985 = dma.done.wait [#allocation4], 128  }
 0x6bb   :  { %986 = vsyncadd [#allocation4], 4294967168 }
 0x6bc   :  { %987 = dma.done.wait [#allocation12], 512  }
 0x6bd   :  { %988 = vsyncadd [#allocation12], 4294966784 }
 0x6be   :  { %651 = vsyncpa [#allocation3], 1 }
 0x6bf   :  { %652 = vsyncpa [#allocation8], 1 }
 0x6c0   :  { %653 = vsyncpa [#allocation4], 1 }
 0x6c1   :  { %654 = vsyncpa [#allocation12], 1 }
 0x6c2   :  { %655 = vsyncpa [#allocation5], 1 }

</bundles_post_ra>
